<compile_context>
chip_gen: v5e
topology: v5e:2x2
jax: 0.10.0
libtpu: 0.0.40
codegen_flags: <defaults>
</compile_context>

<pallas_src>
from typing import NamedTuple

import jax
import jax.numpy as jnp
import numpy as np
from jax.experimental import pallas as pl
from jax.experimental.pallas import tpu as pltpu


def _round_up(v, m):
    return (v + m - 1) // m * m


def noisy_layer_kernel(x_ref, wmu_ref, wsig_ref, ein_ref, eout_ref, nb_ref,
                       o_ref, acc_mu_ref, acc_sig_ref):
    k = pl.program_id(2)

    @pl.when(k == 0)
    def _init():
        acc_mu_ref[...] = jnp.zeros_like(acc_mu_ref)
        acc_sig_ref[...] = jnp.zeros_like(acc_sig_ref)

    x = x_ref[...]                                              # (tm, tk)
    # mu path: plain x @ Wmu
    acc_mu_ref[...] += jnp.dot(x, wmu_ref[...],
                               preferred_element_type=jnp.float32)
    # sigma path: (x * eps_in) @ Wsig  (eps_out applied once in finalize)
    acc_sig_ref[...] += jnp.dot(x * ein_ref[...], wsig_ref[...],
                                preferred_element_type=jnp.float32)

    @pl.when(k == pl.num_programs(2) - 1)
    def _finalize():
        y = (acc_mu_ref[...]
             + acc_sig_ref[...] * eout_ref[...]
             + nb_ref[...])
        o_ref[...] = y.astype(o_ref.dtype)


class NoisyLayerParams(NamedTuple):
    w_mu_t: jax.Array      # (Ip, Op) pre-transposed + padded, stream dtype
    w_sigma_t: jax.Array   # (Ip, Op) pre-transposed + padded, stream dtype
    eps_in: jax.Array      # (1, Ip) stream dtype
    eps_out: jax.Array     # (1, Op) f32
    new_b: jax.Array       # (1, Op) f32, = b_mu + b_sigma * eps_out
    in_features: int
    out_features: int
    tk: int
    tn: int


def prepare_noisy_layer(w_mu, w_sigma, b_mu, b_sigma, eps_in, eps_out,
                        *, stream_dtype=jnp.float32):
    """One-time parameter relayout (NOT the hot path).

    Transposes weights to (in, out) so the kernel computes x @ W with no
    in-kernel transpose and lane-dense output stores, pads to tile-aligned
    shapes, and precomputes new_b = b_mu + b_sigma * eps_out.
    """
    out_f, in_f = w_mu.shape
    Ip0 = _round_up(in_f, 128)
    Op0 = _round_up(out_f, 128)

    # Full-K tile when it comfortably fits, else 512 (HBM-roofline friendly).
    tk = Ip0 if Ip0 <= 1024 else 512
    tn = min(512, Op0)
    # v7x megacore: make sure the parallel N axis has >= 2 blocks for mid-size
    # layers so both TensorCores get work (no-op on single-TC v5e/v6e).
    if Op0 // tn < 2 and Op0 >= 256:
        tn = _round_up((Op0 + 1) // 2, 128)

    Ip = _round_up(in_f, tk)
    Op = _round_up(out_f, tn)

    # Zero padding keeps padded-K / padded-N contributions exactly zero.
    w_mu_t = jnp.pad(w_mu.T, ((0, Ip - in_f), (0, Op - out_f))).astype(stream_dtype)
    w_sigma_t = jnp.pad(w_sigma.T, ((0, Ip - in_f), (0, Op - out_f))).astype(stream_dtype)
    ein = jnp.pad(eps_in.reshape(1, in_f),
                  ((0, 0), (0, Ip - in_f))).astype(stream_dtype)
    eout = jnp.pad(eps_out.reshape(1, out_f),
                   ((0, 0), (0, Op - out_f))).astype(jnp.float32)
    new_b = (b_mu + b_sigma * eps_out).reshape(1, out_f).astype(jnp.float32)
    new_b = jnp.pad(new_b, ((0, 0), (0, Op - out_f)))

    return NoisyLayerParams(w_mu_t, w_sigma_t, ein, eout, new_b,
                            int(in_f), int(out_f), int(tk), int(tn))


def noisy_layer(x, params: NoisyLayerParams, *, out_dtype=None):
    """NoisyNet noisy-linear forward.

    x: (B, in_features) -> (B, out_features)
       = x @ (w_mu + w_sigma * outer(eps_out, eps_in)).T + (b_mu + b_sigma*eps_out)
    """
    B, in_f = x.shape
    assert in_f == params.in_features
    Ip, Op = params.w_mu_t.shape
    tk, tn = params.tk, params.tn
    out_f = params.out_features
    out_dtype = out_dtype or x.dtype
    stream_dtype = params.w_mu_t.dtype

    tm = min(_round_up(B, 8), 256)
    Bp = _round_up(B, tm)

    # Only per-call data movement: pad (and possibly cast) the activations.
    x_p = jnp.pad(x, ((0, Bp - B), (0, Ip - in_f))).astype(stream_dtype)

    grid = (Bp // tm, Op // tn, Ip // tk)

    # Rough double-buffered VMEM footprint -> vmem limit (covers v5e's 16 MiB
    # scoped default when tiles get large; capped at v7x's 64 MiB physical).
    isz = jnp.dtype(stream_dtype).itemsize
    est = (2 * (tm * tk + 2 * tk * tn + tk) * isz      # x + 2 weight streams + eps_in
           + 2 * 2 * tn * 4                            # eps_out + new_b (f32)
           + 2 * tm * tn * jnp.dtype(out_dtype).itemsize
           + 2 * tm * tn * 4)                          # two f32 accumulators
    vmem_limit = int(min(max(2 * est, 32 * 1024 * 1024), 64 * 1024 * 1024))

    out = pl.pallas_call(
        noisy_layer_kernel,
        out_shape=jax.ShapeDtypeStruct((Bp, Op), out_dtype),
        grid_spec=pltpu.PrefetchScalarGridSpec(
            num_scalar_prefetch=0,
            grid=grid,
            in_specs=[
                pl.BlockSpec((tm, tk), lambda i, j, k: (i, k)),   # x
                pl.BlockSpec((tk, tn), lambda i, j, k: (k, j)),   # w_mu   (in,out)
                pl.BlockSpec((tk, tn), lambda i, j, k: (k, j)),   # w_sigma(in,out)
                pl.BlockSpec((1, tk), lambda i, j, k: (0, k)),    # eps_in (1,K)
                pl.BlockSpec((1, tn), lambda i, j, k: (0, j)),    # eps_out(1,N)
                pl.BlockSpec((1, tn), lambda i, j, k: (0, j)),    # new_b  (1,N)
            ],
            out_specs=pl.BlockSpec((tm, tn), lambda i, j, k: (i, j)),
            scratch_shapes=[pltpu.VMEM((tm, tn), jnp.float32),
                            pltpu.VMEM((tm, tn), jnp.float32)],
        ),
        compiler_params=pltpu.CompilerParams(
            dimension_semantics=("parallel", "parallel", "arbitrary"),
            vmem_limit_bytes=vmem_limit),
    )(x_p, params.w_mu_t, params.w_sigma_t, params.eps_in, params.eps_out,
      params.new_b)

    return out[:B, :out_f]


def init_noisy_layer_params(key, in_f, out_f, sigma_init=0.5):
    """Deterministic re-implementation of NoisyLayer.__init__ parameter setup.

    Returns the factorized noise vectors (eps_in, eps_out); the kernel applies
    w_epsilon = outer(eps_out, eps_in) implicitly (rank-1 rewrite) and
    b_epsilon == eps_out.
    """
    k_wmu, k_bmu, k_ein, k_eout = jax.random.split(key, 4)
    mu_range = 1.0 / np.sqrt(in_f)

    w_mu = jax.random.uniform(k_wmu, (out_f, in_f), jnp.float32,
                              minval=-mu_range, maxval=mu_range)
    b_mu = jax.random.uniform(k_bmu, (out_f,), jnp.float32,
                              minval=-mu_range, maxval=mu_range)
    const = sigma_init / np.sqrt(in_f)
    w_sigma = jnp.full((out_f, in_f), const, jnp.float32)
    b_sigma = jnp.full((out_f,), const, jnp.float32)

    # Factorized Gaussian noise: f(x) = sign(x) * sqrt(|x|)
    def f(k, size):
        z = jax.random.normal(k, (size,), jnp.float32)
        return jnp.sign(z) * jnp.sqrt(jnp.abs(z))

    eps_in = f(k_ein, in_f)
    eps_out = f(k_eout, out_f)
    return w_mu, b_mu, w_sigma, b_sigma, eps_in, eps_out


def noisy_layer_reference(x, w_mu, w_sigma, b_mu, b_sigma, eps_in, eps_out):
    """Pure-numpy reference of the PyTorch forward (materializes w_epsilon)."""
    x = np.asarray(x, np.float64)
    w_mu = np.asarray(w_mu, np.float64)
    w_sigma = np.asarray(w_sigma, np.float64)
    b_mu = np.asarray(b_mu, np.float64)
    b_sigma = np.asarray(b_sigma, np.float64)
    eps_in = np.asarray(eps_in, np.float64)
    eps_out = np.asarray(eps_out, np.float64)

    w_eps = np.outer(eps_out, eps_in)
    new_w = w_mu + w_sigma * w_eps
    new_b = b_mu + b_sigma * eps_out
    return x @ new_w.T + new_b


if __name__ == "__main__":
    key = jax.random.PRNGKey(0)
    sigma_init = 0.5

    cases = [
        # (batch, in_f, out_f, stream_dtype, rtol, atol)
        (16, 512, 256, jnp.float32, 1e-4, 1e-4),     # full-K tile, N split in 2
        (8, 96, 80, jnp.float32, 1e-4, 1e-4),        # unaligned shapes / padding path
        (32, 1280, 320, jnp.bfloat16, 5e-2, 5e-2),   # K-accumulation + bf16 streams
    ]
    for (batch, in_features, out_features, sdt, rtol, atol) in cases:
        k_params, k_x, key = jax.random.split(key, 3)

        w_mu, b_mu, w_sigma, b_sigma, eps_in, eps_out = init_noisy_layer_params(
            k_params, in_features, out_features, sigma_init)
        x = jax.random.normal(k_x, (batch, in_features), jnp.float32)

        params = prepare_noisy_layer(w_mu, w_sigma, b_mu, b_sigma,
                                     eps_in, eps_out, stream_dtype=sdt)
        y = noisy_layer(x, params, out_dtype=jnp.float32)
        y = jax.block_until_ready(y)

        y_ref = noisy_layer_reference(x, w_mu, w_sigma, b_mu, b_sigma,
                                      eps_in, eps_out)
        np.testing.assert_allclose(np.asarray(y, np.float64), y_ref,
                                   rtol=rtol, atol=atol)

    print("KERNEL_OK")
</pallas_src>

<mosaic_0001>
module attributes {stable_mosaic.version = 11 : i64} {
  func.func @noisy_layer_kernel(%arg0: i32, %arg1: i32, %arg2: i32, %arg3: memref<16x512xf32, #tpu.memory_space<vmem>>, %arg4: memref<512x128xf32, #tpu.memory_space<vmem>>, %arg5: memref<512x128xf32, #tpu.memory_space<vmem>>, %arg6: memref<1x512xf32, #tpu.memory_space<vmem>>, %arg7: memref<1x128xf32, #tpu.memory_space<vmem>>, %arg8: memref<1x128xf32, #tpu.memory_space<vmem>>, %arg9: memref<16x128xf32, #tpu.memory_space<vmem>>, %arg10: memref<16x128xf32, #tpu.memory_space<vmem>>, %arg11: memref<16x128xf32, #tpu.memory_space<vmem>>) attributes {dimension_semantics = [#tpu.dimension_semantics<parallel>, #tpu.dimension_semantics<parallel>, #tpu.dimension_semantics<arbitrary>], iteration_bounds = array<i64: 1, 2, 1>, scalar_prefetch = 0 : i64, scratch_operands = 2 : i64, tpu.core_type = #tpu.core_type<tc>, window_params = [{transform_indices = @transform_0, window_bounds = array<i64: 16, 512>}, {transform_indices = @transform_1, window_bounds = array<i64: 512, 128>}, {transform_indices = @transform_2, window_bounds = array<i64: 512, 128>}, {transform_indices = @transform_3, window_bounds = array<i64: 1, 512>}, {transform_indices = @transform_4, window_bounds = array<i64: 1, 128>}, {transform_indices = @transform_5, window_bounds = array<i64: 1, 128>}, {transform_indices = @transform_6, window_bounds = array<i64: 16, 128>}]} {
    %c0_i32 = arith.constant 0 : i32
    %0 = arith.cmpi eq, %arg2, %c0_i32 : i32
    %1 = arith.extui %0 : i1 to i32
    %c0_i32_0 = arith.constant 0 : i32
    %2 = arith.cmpi ne, %1, %c0_i32_0 : i32
    scf.if %2 {
      %cst_19 = arith.constant 0.000000e+00 : f32
      %20 = vector.broadcast %cst_19 : f32 to vector<16x128xf32>
      %c0_20 = arith.constant 0 : index
      %c0_21 = arith.constant 0 : index
      %21 = vector.load %arg10[%c0_20, %c0_21] : memref<16x128xf32, #tpu.memory_space<vmem>>, vector<16x128xf32>
      tpu.vector_store %arg10[%c0_20, %c0_21], %20 {strides = array<i32>} : memref<16x128xf32, #tpu.memory_space<vmem>>, vector<16x128xf32>,
      %cst_22 = arith.constant 0.000000e+00 : f32
      %22 = vector.broadcast %cst_22 : f32 to vector<16x128xf32>
      %c0_23 = arith.constant 0 : index
      %c0_24 = arith.constant 0 : index
      %23 = vector.load %arg11[%c0_23, %c0_24] : memref<16x128xf32, #tpu.memory_space<vmem>>, vector<16x128xf32>
      tpu.vector_store %arg11[%c0_23, %c0_24], %22 {strides = array<i32>} : memref<16x128xf32, #tpu.memory_space<vmem>>, vector<16x128xf32>,
    } else {
    }
    %c0 = arith.constant 0 : index
    %c0_1 = arith.constant 0 : index
    %3 = vector.load %arg3[%c0, %c0_1] : memref<16x512xf32, #tpu.memory_space<vmem>>, vector<16x512xf32>
    %c0_2 = arith.constant 0 : index
    %c0_3 = arith.constant 0 : index
    %4 = vector.load %arg10[%c0_2, %c0_3] : memref<16x128xf32, #tpu.memory_space<vmem>>, vector<16x128xf32>
    %c0_4 = arith.constant 0 : index
    %c0_5 = arith.constant 0 : index
    %5 = vector.load %arg4[%c0_4, %c0_5] : memref<512x128xf32, #tpu.memory_space<vmem>>, vector<512x128xf32>
    %cst = arith.constant dense<0.000000e+00> : vector<16x128xf32>
    %6 = tpu.matmul %3, %5, %cst {dimension_numbers = #tpu.dot_dimension_numbers<[1], [0], [0], [1], [0, 0, 1, 1], [], []>} : vector<16x512xf32>, vector<512x128xf32>, vector<16x128xf32> -> vector<16x128xf32>
    %7 = arith.addf %4, %6 : vector<16x128xf32>
    %c0_6 = arith.constant 0 : index
    %c0_7 = arith.constant 0 : index
    %8 = vector.load %arg10[%c0_6, %c0_7] : memref<16x128xf32, #tpu.memory_space<vmem>>, vector<16x128xf32>
    tpu.vector_store %arg10[%c0_6, %c0_7], %7 {strides = array<i32>} : memref<16x128xf32, #tpu.memory_space<vmem>>, vector<16x128xf32>,
    %c0_8 = arith.constant 0 : index
    %c0_9 = arith.constant 0 : index
    %9 = vector.load %arg11[%c0_8, %c0_9] : memref<16x128xf32, #tpu.memory_space<vmem>>, vector<16x128xf32>
    %c0_10 = arith.constant 0 : index
    %c0_11 = arith.constant 0 : index
    %10 = vector.load %arg6[%c0_10, %c0_11] : memref<1x512xf32, #tpu.memory_space<vmem>>, vector<1x512xf32>
    %11 = vector.broadcast %10 : vector<1x512xf32> to vector<16x512xf32>
    %12 = arith.mulf %3, %11 : vector<16x512xf32>
    %c0_12 = arith.constant 0 : index
    %c0_13 = arith.constant 0 : index
    %13 = vector.load %arg5[%c0_12, %c0_13] : memref<512x128xf32, #tpu.memory_space<vmem>>, vector<512x128xf32>
    %cst_14 = arith.constant dense<0.000000e+00> : vector<16x128xf32>
    %14 = tpu.matmul %12, %13, %cst_14 {dimension_numbers = #tpu.dot_dimension_numbers<[1], [0], [0], [1], [0, 0, 1, 1], [], []>} : vector<16x512xf32>, vector<512x128xf32>, vector<16x128xf32> -> vector<16x128xf32>
    %15 = arith.addf %9, %14 : vector<16x128xf32>
    %c0_15 = arith.constant 0 : index
    %c0_16 = arith.constant 0 : index
    %16 = vector.load %arg11[%c0_15, %c0_16] : memref<16x128xf32, #tpu.memory_space<vmem>>, vector<16x128xf32>
    tpu.vector_store %arg11[%c0_15, %c0_16], %15 {strides = array<i32>} : memref<16x128xf32, #tpu.memory_space<vmem>>, vector<16x128xf32>,
    %c0_i32_17 = arith.constant 0 : i32
    %17 = arith.cmpi eq, %arg2, %c0_i32_17 : i32
    %18 = arith.extui %17 : i1 to i32
    %c0_i32_18 = arith.constant 0 : i32
    %19 = arith.cmpi ne, %18, %c0_i32_18 : i32
    scf.if %19 {
      %c0_19 = arith.constant 0 : index
      %c0_20 = arith.constant 0 : index
      %20 = vector.load %arg10[%c0_19, %c0_20] : memref<16x128xf32, #tpu.memory_space<vmem>>, vector<16x128xf32>
      %c0_21 = arith.constant 0 : index
      %c0_22 = arith.constant 0 : index
      %21 = vector.load %arg11[%c0_21, %c0_22] : memref<16x128xf32, #tpu.memory_space<vmem>>, vector<16x128xf32>
      %c0_23 = arith.constant 0 : index
      %c0_24 = arith.constant 0 : index
      %22 = vector.load %arg7[%c0_23, %c0_24] : memref<1x128xf32, #tpu.memory_space<vmem>>, vector<1x128xf32>
      %23 = vector.broadcast %22 : vector<1x128xf32> to vector<16x128xf32>
      %24 = arith.mulf %21, %23 : vector<16x128xf32>
      %25 = arith.addf %20, %24 : vector<16x128xf32>
      %c0_25 = arith.constant 0 : index
      %c0_26 = arith.constant 0 : index
      %26 = vector.load %arg8[%c0_25, %c0_26] : memref<1x128xf32, #tpu.memory_space<vmem>>, vector<1x128xf32>
      %27 = vector.broadcast %26 : vector<1x128xf32> to vector<16x128xf32>
      %28 = arith.addf %25, %27 : vector<16x128xf32>
      %c0_27 = arith.constant 0 : index
      %c0_28 = arith.constant 0 : index
      %29 = vector.load %arg9[%c0_27, %c0_28] : memref<16x128xf32, #tpu.memory_space<vmem>>, vector<16x128xf32>
      tpu.vector_store %arg9[%c0_27, %c0_28], %28 {strides = array<i32>} : memref<16x128xf32, #tpu.memory_space<vmem>>, vector<16x128xf32>,
    } else {
    }
    return
  }
  func.func @transform_0(%arg0: i32, %arg1: i32, %arg2: i32) -> (i32, i32) {
    %c0_i32 = arith.constant 0 : i32
    return %arg0, %arg2 : i32, i32
  }
  func.func @transform_1(%arg0: i32, %arg1: i32, %arg2: i32) -> (i32, i32) {
    %c0_i32 = arith.constant 0 : i32
    return %arg2, %arg1 : i32, i32
  }
  func.func @transform_2(%arg0: i32, %arg1: i32, %arg2: i32) -> (i32, i32) {
    %c0_i32 = arith.constant 0 : i32
    return %arg2, %arg1 : i32, i32
  }
  func.func @transform_3(%arg0: i32, %arg1: i32, %arg2: i32) -> (i32, i32) {
    %c0_i32 = arith.constant 0 : i32
    %c0_i32_0 = arith.constant 0 : i32
    return %c0_i32, %arg2 : i32, i32
  }
  func.func @transform_4(%arg0: i32, %arg1: i32, %arg2: i32) -> (i32, i32) {
    %c0_i32 = arith.constant 0 : i32
    %c0_i32_0 = arith.constant 0 : i32
    return %c0_i32, %arg1 : i32, i32
  }
  func.func @transform_5(%arg0: i32, %arg1: i32, %arg2: i32) -> (i32, i32) {
    %c0_i32 = arith.constant 0 : i32
    %c0_i32_0 = arith.constant 0 : i32
    return %c0_i32, %arg1 : i32, i32
  }
  func.func @transform_6(%arg0: i32, %arg1: i32, %arg2: i32) -> (i32, i32) {
    %c0_i32 = arith.constant 0 : i32
    return %arg0, %arg1 : i32, i32
  }
}

</mosaic_0001>

<bundles_post_ra>
// kernel: tpu_custom_call.1
= control target key start
LH: loop header
LB: loop body
LE: loop exit
PB: predicated region body
PF: predicated region fallthrough
CT: control target
= control target key end

     0   :  { %s1714_s0 = inlined_call_operand.hbm [shape: f32[16,512], index: 0, kind: input, shape index: {}]   ;;  %s1715_s1 = inlined_call_operand.hbm [shape: f32[512,256], index: 1, kind: input, shape index: {}]   ;;  %s1716_s2 = inlined_call_operand.hbm [shape: f32[512,256], index: 2, kind: input, shape index: {}]   ;;  %s1717_s3 = inlined_call_operand.hbm [shape: f32[1,512], index: 3, kind: input, shape index: {}]   ;;  %s1718_s4 = inlined_call_operand.vmem [shape: f32[1,256], index: 4, kind: input, shape index: {}]   ;;  %s1719_s5 = inlined_call_operand.vmem [shape: f32[1,256], index: 5, kind: input, shape index: {}]   ;;  %s1720_s6 = inlined_call_operand.hbm [shape: f32[16,256], index: 6, kind: output, shape index: {}]  }
   0x1   :  { %1726 = sst [smem:[#allocation19_spill]] %s1714_s0 }
   0x2   :  { %1727 = sst [smem:[#allocation20_spill]] %s1715_s1 }
   0x3   :  { %1728 = sst [smem:[#allocation21_spill]] %s1716_s2 }
   0x4   :  { %11 = vsyncpa [#allocation5], 0 }
   0x5   :  { %12 = vsyncpa [#allocation8], 0 }
   0x6   :  { %14 = vsyncpa [#allocation8 + $0x1], 0 }
   0x7   :  { %15 = vsyncpa [#allocation11], 0 }
   0x8   :  { %16 = vsyncpa [#allocation6], 0 }
   0x9   :  { %18 = vsyncpa [#allocation6 + $0x1], 0  ;;  %s1357_s21 = smov 0   ;;  %s1359_s22 = smov 0  }
   0xa   :  { %s1361_s23 = smov 0   ;;  %s1363_s24 = smov 0  }
   0xb   :  { %s1365_s25 = smov 0   ;;  %s1367_s26 = smov 0  }
   0xc LB: > { %1729 = sst [smem:[#allocation17_spill]] %s1306_s25  ;;  %s39_s27 = sadd.s32 1, %s1306_s25  ;;  %s1310_s26 = sphi %s1367_s26, %s24_s26   ;;  %s1306_s25 = sphi %s1365_s25, %s1744_s25   ;;  %s1302_s24 = sphi %s1363_s24, %s1743_s24   ;;  %s1298_s23 = sphi %s1361_s23, %s1747_s23   ;;  %s1294_s22 = sphi %s1359_s22, %s1746_s22   ;;  %s1290_s21 = sphi %s1357_s21, %s1745_s21  }
   0xd   : > { %s80_s28 = sadd.s32 1, %s1298_s23  ;;  %p41_p0 = scmp.ge.s32.totalorder %s39_s27, 2 }
   0xe   : > { %p87_p1 = scmp.ne.s32.totalorder %s1298_s23, %s1294_s22  ;;  %p88_p2 = scmp.eq.s32.totalorder %s1310_s26, 0 }
   0xf   : > { %p987_p3 = scmp.ge.s32.totalorder %s1310_s26, 2  ;;  %s1749_s27 = smov (%p41_p0, %s39_s27), 0 }
  0x10   : > { %1730 = sst [smem:[#allocation18_spill]] %s1749_s27  ;;  %p1398_p4 = por %p88_p2, %p87_p1 }
  0x11   : > { %p1036_p5 = scmp.lt.s32.totalorder %s1310_s26, 2  ;;  %s76_s30 = ssub.s32 %s1306_s25, %s1749_s27 }
  0x12   : > { %s285_s7 = sand.u32 1, %s1310_s26   ;;  %p78_p6 = scmp.eq.s32.totalorder %s76_s30, 0 }
  0x13   : > { %s287_s8 = sand.u32 1, %s1298_s23   ;;  %s989_s9 = sshll.u32 %s1306_s25, 3 }
  0x14   : > { %s1409_s10 = scalar_select %p78_p6, %s1298_s23, %s80_s28  }
  0x15   : > { %s988_s11 = sshll.u32 %s287_s8, 9  ;;  %s1732_s1 = sld [smem:[#allocation20_spill]] }
  0x16   : > { %s289_s16 = scalar_lea.vmem [#allocation7], %s988_s11  ;;  %p1418_p7 = pnand %p1036_p5, %p1398_p4 }
  0x17   : > { %s299_s17 = sshll.u32 %s289_s16, 4  ;;  %s1422_s19 = scalar_lea.sflag [#allocation8], %s285_s7  ;;  %s300_s17 = int_to_ptr.vmem [resolvable:$true] %s299_s17 }
  0x18   : > { %s1721_s20 = smov 256   ;;  %s1722_s28 = smov 128  }
  0x19   : > { %s1723_s30 = smov 8   ;;  %s1734_s2 = sld [smem:[#allocation21_spill]] }
  0x1a   : > { %s313_s7 = scalar_lea.vmem [#allocation9], %s988_s11  ;;  %s1438_s16 = sadd.s32 4294967295, %s1310_s26  }
  0x1b   : > { %s296_s14 = scalar_lea.hbm %s1732_s1, %s989_s9  ;;  %s983_s1 = sadd.s32 4294967294, %s1310_s26  }
  0x1c   : > { %s297_s15 = sshll.u32 %s296_s14, 4  ;;  %s1435_s14 = sshll.u32 %s313_s7, 4  ;;  %s298_s15 = int_to_ptr.hbm [resolvable:$true] %s297_s15  ;;  %s324_s14 = int_to_ptr.vmem [resolvable:$true] %s1435_s14 }
  0x1d   : > { %1026 = dma.hbm_to_vmem [thread:$0]  (!%p1418_p7), %s298_s15, 8192, %s300_s17, %s1422_s19, %s1721_s20, %s1722_s28, %s1723_s30  }
  0x1e   : > { %p93_p8 = scmp.ne.s32.totalorder %s1294_s22, %s1290_s21  ;;  %p94_p9 = scmp.eq.s32.totalorder %s1438_s16, 0 }
  0x1f   : > { %s320_s12 = scalar_lea.hbm %s1734_s2, %s989_s9  ;;  %p225_p10 = scmp.eq.s32.totalorder %s1438_s16, 1 }
  0x20   : > { %s321_s13 = sshll.u32 %s320_s12, 4  ;;  %p231_p11 = scmp.eq.s32.totalorder %s983_s1, 1  ;;  %s1433_s13 = int_to_ptr.hbm [resolvable:$true] %s321_s13 }
  0x21   : > { %p1447_p12 = por %p94_p9, %p93_p8  ;;  %p984_p13 = scmp.ge.s32.totalorder %s1310_s26, 1 }
  0x22   : > { %p1455_p0 = por %p225_p10, %p87_p1  ;;  %p1459_p2 = por %p231_p11, %p93_p8 }
  0x23   : > { %p238_p4 = scmp.lt.s32.totalorder %s1310_s26, 3  ;;  %s1738_s0 = sld [smem:[#allocation19_spill]] }
  0x24   : > { %s1315_s12 = smov [#allocation4]   ;;  %s272_s17 = sshll.u32 %s1717_s3, 4  ;;  %s273_s17 = int_to_ptr.hbm [resolvable:$true] %s272_s17 }
  0x25   : > { %p1468_p5 = pnand %p984_p13, %p238_p4  ;;  %s257_s7 = sshll.u32 %s1315_s12, 4  ;;  %s258_s7 = int_to_ptr.vmem [resolvable:$true] %s257_s7 }
  0x26   : > { %s1316_s29 = smov [#allocation10]   ;;  %s1318_s2 = smov 32  }
  0x27   : > { %p1016_p1 = pneg %p1468_p5  ;;  %s274_s30 = sshll.u32 %s1316_s29, 4  ;;  %s275_s30 = int_to_ptr.vmem [resolvable:$true] %s274_s30 }
  0x28   : > { %s1740_s27 = smov 8   ;;  %s1741_s12 = smov 128  }
  0x29   : > { %s255_s1 = sshll.u32 %s1738_s0, 4  ;;  %p1017_p6 = pnand %p1016_p1, %p94_p9  ;;  %s256_s1 = int_to_ptr.hbm [resolvable:$true] %s255_s1 }
  0x2a   : > { %s1317_s0 = smov 512   ;;  %s1742_s25 = smov 256  }
  0x2b   : > { %1019 = dma.hbm_to_vmem [thread:$0]  (!%p1017_p6), %s256_s1, 1024, %s258_s7, [#allocation5], %s1317_s0, %s1317_s0, %s1318_s2  }
  0x2c   : > { %1022 = dma.hbm_to_vmem [thread:$0]  (!%p1017_p6), %s273_s17, 64, %s275_s30, [#allocation11]  }
  0x2d   : > { %1029 = dma.hbm_to_vmem [thread:$0]  (!%p1418_p7), %s1433_s13, 8192, %s324_s14, %s1422_s19, %s1742_s25, %s1741_s12, %s1740_s27  }
  0x2e   : > { %347 = sbr.rel (%p1468_p5) target bundleno = 281 (0x119), region = 44 }
  0x33   : > { %1273 = dma.done.wait (%p94_p9), [#allocation5], 1024  }
  0x34   : > { %1275 = vsyncadd (%p94_p9), [#allocation5], 4294966272  ;;  %s354_s0 = sand.u32 1, %s1438_s16   ;;  %s1494_s2 = sand.u32 1, %s1294_s22  }
  0x35   : > { %s994_s18 = sshll.u32 %s1494_s2, 9  ;;  %s355_s20 = scalar_lea.sflag [#allocation8], %s354_s0 }
  0x36   : > { %s1497_s28 = scalar_lea.vmem [#allocation7], %s994_s18 }
  0x37   : > { %1277 = dma.done.wait (%p1447_p12), %s355_s20, 16384  }
  0x38   : > { %1279 = vsyncadd (%p1447_p12), %s355_s20, 4294950912  ;;  %s1503_s25 = scalar_lea.vmem [#allocation9], %s994_s18 }
  0x39   : > { %1281 = dma.done.wait (%p94_p9), [#allocation11], 64  }
  0x3a   : > { %1283 = vsyncadd (%p94_p9), [#allocation11], 4294967232  ;;  %v491_v0 = vld [vmem:[%s1497_s28 + $0x178] sm:$0xff]  ;;  %v490_v1 = vld [vmem:[%s1497_s28 + $0x170] sm:$0xff]  ;;  %p419_p7 = scmp.lt.s32.totalorder %s1302_s24, 1  ;;  %s997_s1 = sshll.u32 %s1494_s2, 4 }
  0x3b   : > { %v507_v2 = vld [vmem:[%s1497_s28 + $0x1f8] sm:$0xff]  ;;  %554 = vmatpush.msra.mxu2 %v491_v0  ;;  %v489_v5 = vld [vmem:[%s1497_s28 + $0x168] sm:$0xff]  ;;  %v506_v6 = vld [vmem:[%s1497_s28 + $0x1f0] sm:$0xff]  ;;  %s999_s8 = sshll.u32 %s1302_s24, 3  ;;  %s413_s12 = scalar_lea.vmem [#allocation12], %s997_s1 }
  0x3c   : > { %577 = vmatpush.msra.mxu3 %v507_v2  ;;  %v459_v3 = vld [vmem:[%s1497_s28 + $0x78] sm:$0xff]  ;;  %v458_v7 = vld [vmem:[%s1497_s28 + $0x70] sm:$0xff]  ;;  %v505_v9 = vld [vmem:[%s1497_s28 + $0x1e8] sm:$0xff]  ;;  %s1665_s27 = scalar_select %p419_p7, %s1302_s24, 1 }
  0x3d   : > { %v475_v4 = vld [vmem:[%s1497_s28 + $0xf8] sm:$0xff]  ;;  %508 = vmatpush.msra.mxu0 %v459_v3  ;;  %v474_v8 = vld [vmem:[%s1497_s28 + $0xf0] sm:$0xff]  ;;  %555 = vmatpush.msra.mxu2 %v490_v1  ;;  %v457_v10 = vld [vmem:[%s1497_s28 + $0x68] sm:$0xff]  ;;  %s821_s29 = scalar_lea.hbm %s1720_s6, %s999_s8  ;;  %s822_s0 = sshll.u32 %s413_s12, 4  ;;  %s823_s0 = int_to_ptr.vmem [resolvable:$true] %s822_s0 }
  0x3e   : > { %531 = vmatpush.msra.mxu1 %v475_v4  ;;  %578 = vmatpush.msra.mxu3 %v506_v6  ;;  %v488_v11 = vld [vmem:[%s1497_s28 + $0x160] sm:$0xff]  ;;  %v473_v12 = vld [vmem:[%s1497_s28 + $0xe8] sm:$0xff]  ;;  %v487_v16 = vld [vmem:[%s1497_s28 + $0x158] sm:$0xff]  ;;  %s421_s13 = scalar_lea.vmem %s1718_s4, %s1665_s27  ;;  %s424_s9 = scalar_lea.vmem %s1719_s5, %s1665_s27 }
  0x3f   : > { %509 = vmatpush.msra.mxu0 %v458_v7  ;;  %v504_v13 = vld [vmem:[%s1497_s28 + $0x1e0] sm:$0xff]  ;;  %556 = vmatpush.msra.mxu2 %v489_v5  ;;  %v503_v17 = vld [vmem:[%s1497_s28 + $0x1d8] sm:$0xff]  ;;  %v486_v20 = vld [vmem:[%s1497_s28 + $0x150] sm:$0xff]  ;;  %s824_s18 = sshll.u32 %s821_s29, 4  ;;  %s808_s24 = scalar_lea.sflag [#allocation6], %s1494_s2  ;;  %s825_s18 = int_to_ptr.hbm [resolvable:$true] %s824_s18 }
  0x40   : > { %532 = vmatpush.msra.mxu1 %v474_v8  ;;  %579 = vmatpush.msra.mxu3 %v505_v9  ;;  %v456_v14 = vld [vmem:[%s1497_s28 + $0x60] sm:$0xff]  ;;  %v455_v18 = vld [vmem:[%s1497_s28 + $0x58] sm:$0xff]  ;;  %v502_v21 = vld [vmem:[%s1497_s28 + $0x1d0] sm:$0xff]  ;;  %s1234_s20 = sshra.s32 %s825_s18, 4  ;;  %s1240_s19 = scalar_lea.hbm %s1720_s6, 32  ;;  %s1235_s20 = int_to_ptr.hbm [resolvable:$true] %s1234_s20 }
  0x41   : > { %v472_v15 = vld [vmem:[%s1497_s28 + $0xe0] sm:$0xff]  ;;  %510 = vmatpush.msra.mxu0 %v457_v10  ;;  %557 = vmatpush.msra.mxu2 %v488_v11  ;;  %v471_v19 = vld [vmem:[%s1497_s28 + $0xd8] sm:$0xff]  ;;  %v454_v22 = vld [vmem:[%s1497_s28 + $0x50] sm:$0xff]  ;;  %p1241_p11 = scmp.lt.s32.totalorder %s1235_s20, %s1720_s6 }
  0x42   : > { %533 = vmatpush.msra.mxu1 %v473_v12  ;;  %580 = vmatpush.msra.mxu3 %v504_v13  ;;  %v470_v23 = vld [vmem:[%s1497_s28 + $0xd0] sm:$0xff]  ;;  %v485_v24 = vld [vmem:[%s1497_s28 + $0x148] sm:$0xff]  ;;  %v484_v28 = vld [vmem:[%s1497_s28 + $0x140] sm:$0xff] }
  0x43   : > { %511 = vmatpush.msra.mxu0 %v456_v14  ;;  %558 = vmatpush.msra.mxu2 %v487_v16  ;;  %v501_v25 = vld [vmem:[%s1497_s28 + $0x1c8] sm:$0xff]  ;;  %v500_v29 = vld [vmem:[%s1497_s28 + $0x1c0] sm:$0xff]  ;;  %v483_v32 = vld [vmem:[%s1497_s28 + $0x138] sm:$0xff] }
  0x44   : > { %534 = vmatpush.msra.mxu1 %v472_v15  ;;  %581 = vmatpush.msra.mxu3 %v503_v17  ;;  %v453_v26 = vld [vmem:[%s1497_s28 + $0x48] sm:$0xff]  ;;  %v452_v30 = vld [vmem:[%s1497_s28 + $0x40] sm:$0xff]  ;;  %v499_v33 = vld [vmem:[%s1497_s28 + $0x1b8] sm:$0xff] }
  0x45   : > { %512 = vmatpush.msra.mxu0 %v455_v18  ;;  %559 = vmatpush.msra.mxu2 %v486_v20  ;;  %v469_v27 = vld [vmem:[%s1497_s28 + $0xc8] sm:$0xff]  ;;  %v468_v31 = vld [vmem:[%s1497_s28 + $0xc0] sm:$0xff]  ;;  %v451_v34 = vld [vmem:[%s1497_s28 + $0x38] sm:$0xff] }
  0x46   : > { %535 = vmatpush.msra.mxu1 %v471_v19  ;;  %582 = vmatpush.msra.mxu3 %v502_v21  ;;  %v467_v35 = vld [vmem:[%s1497_s28 + $0xb8] sm:$0xff]  ;;  %v482_v36 = vld [vmem:[%s1497_s28 + $0x130] sm:$0xff]  ;;  %v481_v40 = vld [vmem:[%s1497_s28 + $0x128] sm:$0xff] }
  0x47   : > { %513 = vmatpush.msra.mxu0 %v454_v22  ;;  %560 = vmatpush.msra.mxu2 %v485_v24  ;;  %v498_v37 = vld [vmem:[%s1497_s28 + $0x1b0] sm:$0xff]  ;;  %v497_v41 = vld [vmem:[%s1497_s28 + $0x1a8] sm:$0xff]  ;;  %v480_v44 = vld [vmem:[%s1497_s28 + $0x120] sm:$0xff] }
  0x48   : > { %536 = vmatpush.msra.mxu1 %v470_v23  ;;  %583 = vmatpush.msra.mxu3 %v501_v25  ;;  %v450_v38 = vld [vmem:[%s1497_s28 + $0x30] sm:$0xff]  ;;  %v449_v42 = vld [vmem:[%s1497_s28 + $0x28] sm:$0xff]  ;;  %v496_v45 = vld [vmem:[%s1497_s28 + $0x1a0] sm:$0xff] }
  0x49   : > { %514 = vmatpush.msra.mxu0 %v453_v26  ;;  %561 = vmatpush.msra.mxu2 %v484_v28  ;;  %v466_v39 = vld [vmem:[%s1497_s28 + $0xb0] sm:$0xff]  ;;  %v465_v43 = vld [vmem:[%s1497_s28 + $0xa8] sm:$0xff]  ;;  %v448_v46 = vld [vmem:[%s1497_s28 + $0x20] sm:$0xff] }
  0x4a   : > { %537 = vmatpush.msra.mxu1 %v469_v27  ;;  %584 = vmatpush.msra.mxu3 %v500_v29  ;;  %v464_v47 = vld [vmem:[%s1497_s28 + $0xa0] sm:$0xff]  ;;  %v479_v48 = vld [vmem:[%s1497_s28 + $0x118] sm:$0xff]  ;;  %v478_v52 = vld [vmem:[%s1497_s28 + $0x110] sm:$0xff] }
  0x4b   : > { %515 = vmatpush.msra.mxu0 %v452_v30  ;;  %562 = vmatpush.msra.mxu2 %v483_v32  ;;  %v495_v49 = vld [vmem:[%s1497_s28 + $0x198] sm:$0xff]  ;;  %v494_v53 = vld [vmem:[%s1497_s28 + $0x190] sm:$0xff]  ;;  %v477_v56 = vld [vmem:[%s1497_s28 + $0x108] sm:$0xff] }
  0x4c   : > { %538 = vmatpush.msra.mxu1 %v468_v31  ;;  %585 = vmatpush.msra.mxu3 %v499_v33  ;;  %v447_v50 = vld [vmem:[%s1497_s28 + $0x18] sm:$0xff]  ;;  %v446_v54 = vld [vmem:[%s1497_s28 + $0x10] sm:$0xff]  ;;  %v493_v57 = vld [vmem:[%s1497_s28 + $0x188] sm:$0xff] }
  0x4d   : > { %516 = vmatpush.msra.mxu0 %v451_v34  ;;  %563 = vmatpush.msra.mxu2 %v482_v36  ;;  %v463_v51 = vld [vmem:[%s1497_s28 + $0x98] sm:$0xff]  ;;  %v462_v55 = vld [vmem:[%s1497_s28 + $0x90] sm:$0xff]  ;;  %v445_v58 = vld [vmem:[%s1497_s28 + $0x8] sm:$0xff] }
  0x4e   : > { %539 = vmatpush.msra.mxu1 %v467_v35  ;;  %586 = vmatpush.msra.mxu3 %v498_v37  ;;  %v461_v59 = vld [vmem:[%s1497_s28 + $0x88] sm:$0xff]  ;;  %v476_v60 = vld [vmem:[%s1497_s28 + $0x100] sm:$0xff]  ;;  %v671_v62 = vld [vmem:[%s1503_s25 + $0x178] sm:$0xff] }
  0x4f   : > { %517 = vmatpush.msra.mxu0 %v450_v38  ;;  %564 = vmatpush.msra.mxu2 %v481_v40  ;;  %v492_v61 = vld [vmem:[%s1497_s28 + $0x180] sm:$0xff]  ;;  %v687_v63 = vld [vmem:[%s1503_s25 + $0x1f8] sm:$0xff]  ;;  %v670_v2 = vld [vmem:[%s1503_s25 + $0x170] sm:$0xff] }
  0x50   : > { %540 = vmatpush.msra.mxu1 %v466_v39  ;;  %587 = vmatpush.msra.mxu3 %v497_v41  ;;  %v444_v0 = vld [vmem:[%s1497_s28] sm:$0xff]  ;;  %v639_v3 = vld [vmem:[%s1503_s25 + $0x78] sm:$0xff]  ;;  %v686_v5 = vld [vmem:[%s1503_s25 + $0x1f0] sm:$0xff] }
  0x51   : > { %518 = vmatpush.msra.mxu0 %v449_v42  ;;  %565 = vmatpush.msra.mxu2 %v480_v44  ;;  %v460_v1 = vld [vmem:[%s1497_s28 + $0x80] sm:$0xff]  ;;  %v655_v4 = vld [vmem:[%s1503_s25 + $0xf8] sm:$0xff]  ;;  %v669_v6 = vld [vmem:[%s1503_s25 + $0x168] sm:$0xff]  ;;  %s1236_s28 = scalar_lea.hbm %s1235_s20, 16 }
  0x52   : > { %541 = vmatpush.msra.mxu1 %v465_v43  ;;  %588 = vmatpush.msra.mxu3 %v496_v45  ;;  %v638_v7 = vld [vmem:[%s1503_s25 + $0x70] sm:$0xff]  ;;  %v685_v9 = vld [vmem:[%s1503_s25 + $0x1e8] sm:$0xff]  ;;  %v668_v10 = vld [vmem:[%s1503_s25 + $0x160] sm:$0xff]  ;;  %p1237_p8 = scmp.ne.s32.totalorder %s1235_s20, %s1236_s28  ;;  %p1242_p12 = scmp.lt.s32.totalorder %s1240_s19, %s1236_s28 }
  0x53   : > { %519 = vmatpush.msra.mxu0 %v448_v46  ;;  %566 = vmatpush.msra.mxu2 %v479_v48  ;;  %v654_v8 = vld [vmem:[%s1503_s25 + $0xf0] sm:$0xff]  ;;  %v637_v11 = vld [vmem:[%s1503_s25 + $0x68] sm:$0xff]  ;;  %v684_v13 = vld [vmem:[%s1503_s25 + $0x1e0] sm:$0xff] }
  0x54   : > { %542 = vmatpush.msra.mxu1 %v464_v47  ;;  %589 = vmatpush.msra.mxu3 %v495_v49  ;;  %v653_v12 = vld [vmem:[%s1503_s25 + $0xe8] sm:$0xff]  ;;  %v667_v14 = vld [vmem:[%s1503_s25 + $0x158] sm:$0xff]  ;;  %v636_v15 = vld [vmem:[%s1503_s25 + $0x60] sm:$0xff]  ;;  %p1238_p9 = pnand %p1237_p8, %p1455_p0  ;;  %p1243_p13 = por %p1242_p12, %p1241_p11 }
  0x55   : > { %520 = vmatpush.msra.mxu0 %v447_v50  ;;  %567 = vmatpush.msra.mxu2 %v478_v52  ;;  %v652_v16 = vld [vmem:[%s1503_s25 + $0xe0] sm:$0xff]  ;;  %v683_v17 = vld [vmem:[%s1503_s25 + $0x1d8] sm:$0xff]  ;;  %v666_v18 = vld [vmem:[%s1503_s25 + $0x150] sm:$0xff] }
  0x56   : > { %543 = vmatpush.msra.mxu1 %v463_v51  ;;  %590 = vmatpush.msra.mxu3 %v494_v53  ;;  %v635_v19 = vld [vmem:[%s1503_s25 + $0x58] sm:$0xff]  ;;  %v682_v21 = vld [vmem:[%s1503_s25 + $0x1d0] sm:$0xff]  ;;  %v665_v22 = vld [vmem:[%s1503_s25 + $0x148] sm:$0xff]  ;;  %p1239_p10 = pneg %p1238_p9 }
  0x57   : > { %521 = vmatpush.msra.mxu0 %v446_v54  ;;  %568 = vmatpush.msra.mxu2 %v477_v56  ;;  %v651_v20 = vld [vmem:[%s1503_s25 + $0xd8] sm:$0xff]  ;;  %v634_v23 = vld [vmem:[%s1503_s25 + $0x50] sm:$0xff]  ;;  %v681_v25 = vld [vmem:[%s1503_s25 + $0x1c8] sm:$0xff] }
  0x58   : > { %544 = vmatpush.msra.mxu1 %v462_v55  ;;  %591 = vmatpush.msra.mxu3 %v493_v57  ;;  %v650_v24 = vld [vmem:[%s1503_s25 + $0xd0] sm:$0xff]  ;;  %v664_v26 = vld [vmem:[%s1503_s25 + $0x140] sm:$0xff]  ;;  %v633_v27 = vld [vmem:[%s1503_s25 + $0x48] sm:$0xff]  ;;  %p1244_p4 = pnand %p1243_p13, %p1239_p10 }
  0x59   : > { %522 = vmatpush.msra.mxu0 %v445_v58  ;;  %569 = vmatpush.msra.mxu2 %v476_v60  ;;  %v1601_v28 = vld [vmem:[#allocation4 + $0x10] sm:$0xff]  ;;  %v649_v29 = vld [vmem:[%s1503_s25 + $0xc8] sm:$0xff]  ;;  %v663_v30 = vld [vmem:[%s1503_s25 + $0x138] sm:$0xff] }
  0x5a   : > { %545 = vmatpush.msra.mxu1 %v461_v59  ;;  %592 = vmatpush.msra.mxu3 %v492_v61  ;;  %v680_v31 = vld [vmem:[%s1503_s25 + $0x1c0] sm:$0xff]  ;;  %v1606_v32 = vld [vmem:[#allocation4 + $0x18] sm:$0xff]  ;;  %v662_v35 = vld [vmem:[%s1503_s25 + $0x130] sm:$0xff] }
  0x5b   : > { %734 = vmatpush.msrb.mxu2 %v671_v62  ;;  %523 = vmatpush.msra.mxu0 %v444_v0  ;;  %v632_v33 = vld [vmem:[%s1503_s25 + $0x40] sm:$0xff]  ;;  %v679_v36 = vld [vmem:[%s1503_s25 + $0x1b8] sm:$0xff]  ;;  %v1616_v38 = vld [vmem:[#allocation4 + $0x8] sm:$0xff] }
  0x5c   : > { %757 = vmatpush.msrb.mxu3 %v687_v63  ;;  %546 = vmatpush.msra.mxu1 %v460_v1  ;;  %v648_v34 = vld [vmem:[%s1503_s25 + $0xc0] sm:$0xff]  ;;  %v631_v39 = vld [vmem:[%s1503_s25 + $0x38] sm:$0xff]  ;;  %v661_v41 = vld [vmem:[%s1503_s25 + $0x128] sm:$0xff] }
  0x5d   : > { %735 = vmatpush.msrb.mxu2 %v670_v2  ;;  %688 = vmatpush.msrb.mxu0 %v639_v3  ;;  %v1613_v37 = vld [vmem:[#allocation4] sm:$0xff]  ;;  %v647_v40 = vld [vmem:[%s1503_s25 + $0xb8] sm:$0xff]  ;;  %v678_v42 = vld [vmem:[%s1503_s25 + $0x1b0] sm:$0xff] }
  0x5e   : > { %711 = vmatpush.msrb.mxu1 %v655_v4  ;;  %758 = vmatpush.msrb.mxu3 %v686_v5  ;;  %v630_v43 = vld [vmem:[%s1503_s25 + $0x30] sm:$0xff]  ;;  %v660_v45 = vld [vmem:[%s1503_s25 + $0x120] sm:$0xff]  ;;  %v677_v46 = vld [vmem:[%s1503_s25 + $0x1a8] sm:$0xff] }
  0x5f   : > { %736 = vmatpush.msrb.mxu2 %v669_v6  ;;  %689 = vmatpush.msrb.mxu0 %v638_v7  ;;  %v646_v44 = vld [vmem:[%s1503_s25 + $0xb0] sm:$0xff]  ;;  %v629_v48 = vld [vmem:[%s1503_s25 + $0x28] sm:$0xff]  ;;  %v1632_v50 = vld [vmem:[#allocation10] sm:$0xf] }
  0x60   : > { %712 = vmatpush.msrb.mxu1 %v654_v8  ;;  %759 = vmatpush.msrb.mxu3 %v685_v9  ;;  %v1628_v47 = vld [vmem:[#allocation4 + $0x30] sm:$0xff]  ;;  %v645_v49 = vld [vmem:[%s1503_s25 + $0xa8] sm:$0xff]  ;;  %v659_v51 = vld [vmem:[%s1503_s25 + $0x118] sm:$0xff]  ;;  %v610_v57 = vperm.slane %v1632_v50, 2  ;;  %v611_v0 = vperm.slane %v1632_v50, 3  ;;  %v608_v4 = vperm.slane %v1632_v50, 0 }
  0x61   : > { %737 = vmatpush.msrb.mxu2 %v668_v10  ;;  %690 = vmatpush.msrb.mxu0 %v637_v11  ;;  %v676_v52 = vld [vmem:[%s1503_s25 + $0x1a0] sm:$0xff]  ;;  %v441_v53 = vld [vmem:[#allocation4 + $0x38] sm:$0xff]  ;;  %v658_v56 = vld [vmem:[%s1503_s25 + $0x110] sm:$0xff]  ;;  %v609_v7 = vperm.slane %v1632_v50, 1 }
  0x62   : > { %713 = vmatpush.msrb.mxu1 %v653_v12  ;;  %760 = vmatpush.msrb.mxu3 %v684_v13  ;;  %v628_v54 = vld [vmem:[%s1503_s25 + $0x20] sm:$0xff]  ;;  %v675_v58 = vld [vmem:[%s1503_s25 + $0x198] sm:$0xff]  ;;  %v439_v60 = vld [vmem:[#allocation4 + $0x28] sm:$0xff]  ;;  %v618_v3 = vmul.f32 %v610_v57, %v1601_v28  ;;  %v619_v11 = vmul.f32 %v611_v0, %v1606_v32  ;;  %v616_v13 = vmul.f32 %v608_v4, %v1613_v37 }
  0x63   : > { %738 = vmatpush.msrb.mxu2 %v667_v14  ;;  %691 = vmatpush.msrb.mxu0 %v636_v15  ;;  %v644_v55 = vld [vmem:[%s1503_s25 + $0xa0] sm:$0xff]  ;;  %v627_v61 = vld [vmem:[%s1503_s25 + $0x18] sm:$0xff]  ;;  %v657_v63 = vld [vmem:[%s1503_s25 + $0x108] sm:$0xff]  ;;  %v617_v15 = vmul.f32 %v609_v7, %v1616_v38 }
  0x64   : > { %714 = vmatpush.msrb.mxu1 %v652_v16  ;;  %761 = vmatpush.msrb.mxu3 %v683_v17  ;;  %v438_v59 = vld [vmem:[#allocation4 + $0x20] sm:$0xff]  ;;  %v643_v62 = vld [vmem:[%s1503_s25 + $0x98] sm:$0xff]  ;;  %v674_v1 = vld [vmem:[%s1503_s25 + $0x190] sm:$0xff]  ;;  %v622_v17 = vmul.f32 %v610_v57, %v1628_v47 }
  0x65   : > { %739 = vmatpush.msrb.mxu2 %v666_v18  ;;  %692 = vmatpush.msrb.mxu0 %v635_v19  ;;  %v626_v2 = vld [vmem:[%s1503_s25 + $0x10] sm:$0xff]  ;;  %v656_v6 = vld [vmem:[%s1503_s25 + $0x100] sm:$0xff]  ;;  %v673_v8 = vld [vmem:[%s1503_s25 + $0x188] sm:$0xff]  ;;  %v623_v18 = vmul.f32 %v611_v0, %v441_v53  ;;  %v620_v19 = vmul.f32 %v608_v4, %v438_v59 }
  0x66   : > { %715 = vmatpush.msrb.mxu1 %v651_v20  ;;  %762 = vmatpush.msrb.mxu3 %v682_v21  ;;  %v642_v5 = vld [vmem:[%s1503_s25 + $0x90] sm:$0xff]  ;;  %v625_v9 = vld [vmem:[%s1503_s25 + $0x8] sm:$0xff]  ;;  %v672_v12 = vld [vmem:[%s1503_s25 + $0x180] sm:$0xff]  ;;  %v621_v20 = vmul.f32 %v609_v7, %v439_v60 }
  0x67   : > { %740 = vmatpush.msrb.mxu2 %v665_v22  ;;  %693 = vmatpush.msrb.mxu0 %v634_v23  ;;  %v641_v10 = vld [vmem:[%s1503_s25 + $0x88] sm:$0xff]  ;;  %v624_v14 = vld [vmem:[%s1503_s25] sm:$0xff] }
  0x68   : > { %716 = vmatpush.msrb.mxu1 %v650_v24  ;;  %763 = vmatpush.msrb.mxu3 %v681_v25  ;;  %v640_v16 = vld [vmem:[%s1503_s25 + $0x80] sm:$0xff] }
  0x69   : > { %741 = vmatpush.msrb.mxu2 %v664_v26  ;;  %694 = vmatpush.msrb.mxu0 %v633_v27 }
  0x6a   : > { %570 = vmatmul.f32.vlgmr.msra.gmra.mxu2 %v1601_v28  ;;  %717 = vmatpush.msrb.mxu1 %v649_v29 }
  0x6b   : > { %742 = vmatpush.msrb.mxu2 %v663_v30  ;;  %764 = vmatpush.msrb.mxu3 %v680_v31 }
  0x6c   : > { %593 = vmatmul.f32.vlgmr.msra.gmra.mxu3 %v1606_v32  ;;  %695 = vmatpush.msrb.mxu0 %v632_v33 }
  0x6d   : > { %718 = vmatpush.msrb.mxu1 %v648_v34  ;;  %743 = vmatpush.msrb.mxu2 %v662_v35 }
  0x6e   : > { %765 = vmatpush.msrb.mxu3 %v679_v36  ;;  %524 = vmatmul.f32.vlgmr.msra.gmra.mxu0 %v1613_v37  ;;  %v1098_v36 = vld [vmem:[%s421_s13] ss:$0 sm:$0xff] }
  0x6f   : > { %547 = vmatmul.f32.vlgmr.msra.gmra.mxu1 %v1616_v38  ;;  %696 = vmatpush.msrb.mxu0 %v631_v39 }
  0x70   : > { %719 = vmatpush.msrb.mxu1 %v647_v40  ;;  %744 = vmatpush.msrb.mxu2 %v661_v41 }
  0x71   : > { %766 = vmatpush.msrb.mxu3 %v678_v42  ;;  %697 = vmatpush.msrb.mxu0 %v630_v43  ;;  %v1099_v42 = vld [vmem:[%s424_s9] ss:$0 sm:$0xff] }
  0x72   : > { %720 = vmatpush.msrb.mxu1 %v646_v44  ;;  %745 = vmatpush.msrb.mxu2 %v660_v45 }
  0x73   : > { %767 = vmatpush.msrb.mxu3 %v677_v46  ;;  %573 = vmatmul.f32.gmra.mxu2 %v1628_v47 }
  0x74   : > { %698 = vmatpush.msrb.mxu0 %v629_v48  ;;  %721 = vmatpush.msrb.mxu1 %v645_v49 }
  0x75   : > { %746 = vmatpush.msrb.mxu2 %v659_v51  ;;  %768 = vmatpush.msrb.mxu3 %v676_v52 }
  0x76   : > { %596 = vmatmul.f32.gmra.mxu3 %v441_v53  ;;  %699 = vmatpush.msrb.mxu0 %v628_v54 }
  0x77   : > { %722 = vmatpush.msrb.mxu1 %v644_v55  ;;  %747 = vmatpush.msrb.mxu2 %v658_v56 }
  0x78   : > { %769 = vmatpush.msrb.mxu3 %v675_v58  ;;  %527 = vmatmul.f32.gmra.mxu0 %v438_v59 }
  0x79   : > { %550 = vmatmul.f32.gmra.mxu1 %v439_v60  ;;  %700 = vmatpush.msrb.mxu0 %v627_v61 }
  0x7a   : > { %723 = vmatpush.msrb.mxu1 %v643_v62  ;;  %748 = vmatpush.msrb.mxu2 %v657_v63 }
  0x7b   : > { %770 = vmatpush.msrb.mxu3 %v674_v1  ;;  %701 = vmatpush.msrb.mxu0 %v626_v2 }
  0x7c   : > { %724 = vmatpush.msrb.mxu1 %v642_v5  ;;  %749 = vmatpush.msrb.mxu2 %v656_v6 }
  0x7d   : > { %771 = vmatpush.msrb.mxu3 %v673_v8  ;;  %750 = vmatmul.f32.vlgmr.msrb.gmra.mxu2 %v618_v3 }
  0x7e   : > { %702 = vmatpush.msrb.mxu0 %v625_v9  ;;  %725 = vmatpush.msrb.mxu1 %v641_v10 }
  0x7f   : > { %772 = vmatpush.msrb.mxu3 %v672_v12 }
  0x80   : > { %773 = vmatmul.f32.vlgmr.msrb.gmra.mxu3 %v619_v11  ;;  %703 = vmatpush.msrb.mxu0 %v624_v14 }
  0x81   : > { %726 = vmatpush.msrb.mxu1 %v640_v16  ;;  %704 = vmatmul.f32.vlgmr.msrb.gmra.mxu0 %v616_v13 }
  0x82   : > { %727 = vmatmul.f32.vlgmr.msrb.gmra.mxu1 %v617_v15 }
  0x85   : > { %753 = vmatmul.f32.gmra.mxu2 %v622_v17 }
  0x88   : > { %776 = vmatmul.f32.gmra.mxu3 %v623_v18 }
  0x89   : > { %707 = vmatmul.f32.gmra.mxu0 %v620_v19 }
  0x8a   : > { %730 = vmatmul.f32.gmra.mxu1 %v621_v20 }
  0xeb   : > { %v525_v21 = vpop.f32.mrf.mxu0 }
  0xec   : > { %v548_v22 = vpop.f32.mrf.mxu1 }
  0xed   : > { %v571_v23 = vpop.f32.mrf.mxu2  ;;  %v549_v29 = vadd.f32 %v548_v22, %v525_v21 }
  0xef   : > { %v594_v24 = vpop.f32.mrf.mxu3  ;;  %v572_v34 = vadd.f32 %v571_v23, %v549_v29 }
  0xf1   : > { %v595_v39 = vadd.f32 %v594_v24, %v572_v34 }
  0xf5   : > { %v528_v25 = vpop.f32.mrf.mxu0 }
  0xf6   : > { %v551_v26 = vpop.f32.mrf.mxu1  ;;  %v574_v27 = vpop.f32.mrf.mxu2 }
  0xf7   : > { %v552_v40 = vadd.f32 %v551_v26, %v528_v25 }
  0xf9   : > { %v597_v28 = vpop.f32.mrf.mxu3  ;;  %v575_v48 = vadd.f32 %v574_v27, %v552_v40 }
  0xfb   : > { %v598_v53 = vadd.f32 %v597_v28, %v575_v48 }
  0xfe   : > { %v705_v30 = vpop.f32.mrf.mxu0 }
  0xff   : > { %v728_v31 = vpop.f32.mrf.mxu1 }
 0x100   : > { %v729_v32 = vadd.f32 %v728_v31, %v705_v30  ;;  %v751_v33 = vpop.f32.mrf.mxu2 }
 0x102   : > { %v752_v35 = vadd.f32 %v751_v33, %v729_v32 }
 0x103   : > { %v774_v37 = vpop.f32.mrf.mxu3 }
 0x104   : > { %v775_v38 = vadd.f32 %v774_v37, %v752_v35 }
 0x106   : > { %v795_v41 = vmul.f32 %v1098_v36, %v775_v38  ;;  %v708_v43 = vpop.f32.mrf.mxu0 }
 0x107   : > { %v731_v44 = vpop.f32.mrf.mxu1 }
 0x108   : > { %v797_v45 = vadd.f32 %v795_v41, %v595_v39  ;;  %v732_v46 = vadd.f32 %v731_v44, %v708_v43  ;;  %v754_v47 = vpop.f32.mrf.mxu2 }
 0x10a   : > { %v803_v49 = vadd.f32 %v1099_v42, %v797_v45  ;;  %v755_v50 = vadd.f32 %v754_v47, %v732_v46 }
 0x10b   : > { %v777_v51 = vpop.f32.mrf.mxu3 }
 0x10c   : > { %805 = vst [vmem:[%s413_s12] sm:$0xff] %v803_v49  ;;  %v778_v52 = vadd.f32 %v777_v51, %v755_v50 }
 0x10e   : > { %v796_v54 = vmul.f32 %v1098_v36, %v778_v52 }
 0x110   : > { %v798_v55 = vadd.f32 %v796_v54, %v598_v53 }
 0x112   : > { %v804_v56 = vadd.f32 %v1099_v42, %v798_v55 }
 0x114   : > { %806 = vst [vmem:[%s413_s12 + $0x8] sm:$0xff] %v804_v56 }
 0x115   : > { %1247 = shalt.err (!%p1244_p4)
}
 0x116   : > { %s1319_s2 = smov 128   ;;  %s1320_s14 = smov 256  }
 0x117   : > { %s1321_s16 = smov 8  }
 0x118   : > { %1014 = dma.vmem_to_hbm [thread:$0]  (%p1455_p0), %s823_s0, 256, %s825_s18, %s808_s24, %s1319_s2, %s1320_s14, %s1321_s16  }
 0x119 PF: > { %s839_s9 = sand.u32 1, %s1290_s21   ;;  %p1031_p5 = pnand %p987_p3, %p1459_p2 }
 0x11a   : > { %s840_s1 = scalar_lea.sflag [#allocation6], %s839_s9 }
 0x11b   : > { %p1032_p1 = pneg %p1031_p5 }
 0x11d   : > { %1285 = dma.done.wait (%p1032_p1), %s840_s1, 256  }
 0x11e   : > { %1287 = vsyncadd (%p1032_p1), %s840_s1, 4294967040  ;;  %s24_s26 = sadd.s32 1, %s1310_s26   ;;  %s1743_s24 = sld [smem:[#allocation17_spill]] }
 0x11f   : > { %p21_p6 = scmp.ge.s32.totalorder %s24_s26, 4   ;;  %s1744_s25 = sld [smem:[#allocation18_spill]] }
 0x120   : > { %s1745_s21 = smov %s1294_s22  ;;  %s1746_s22 = smov %s1298_s23 }
 0x121   : > { %s1747_s23 = smov %s1409_s10  ;;  %23 = sbr.rel (!%p21_p6) target bundleno = 12 (0xc), region = 125 }
 0x126   :  { %846 = vsyncpa [#allocation5], 1 }
 0x127   :  { %848 = vsyncpa [#allocation5 + $0x1], 1 }
 0x128   :  { %849 = vsyncpa [#allocation8], 1 }
 0x129   :  { %851 = vsyncpa [#allocation8 + $0x1], 1 }
 0x12a   :  { %852 = vsyncpa [#allocation11], 1 }
 0x12b   :  { %853 = vsyncpa [#allocation6], 1 }
 0x12c   :  { %855 = vsyncpa [#allocation6 + $0x1], 1 }

</bundles_post_ra>
